<compile_context>
chip_gen: v6e
topology: v6e:2x2x1
jax: 0.10.0
libtpu: 0.0.40
codegen_flags: <defaults>
</compile_context>

<pallas_src>
import jax
import jax.numpy as jnp
from jax.experimental import pallas as pl
from jax.experimental.pallas import tpu as pltpu

# ---------------- model hyper-params (small, consistent with the module) ----------------
B = 2            # batch
T = 8            # sequence length
BT = B * T       # 16 tokens -> one tile, one grid step
DSZ_WORD = 16    # dsz of "word" embedding
DSZ_CHAR = 16    # dsz of "char" embedding
DSZ = DSZ_WORD + DSZ_CHAR
HSZ = 32         # projsz == hsz (embeddings_proj: DSZ -> HSZ)
VSZ = 128        # target vocab (output proj: HSZ -> VSZ), lane-dense multiple of 128
VOCAB_WORD = 64
VOCAB_CHAR = 48


def _lm_kernel(tw_ref, tc_ref, ew_ref, ec_ref, wfw_ref, wfc_ref, bf_ref, out_ref):
    """tokens -> in-kernel one-hot embedding gather -> folded projection -> logits."""
    # --- embed(): one-hot gather on the MXU (no XLA take/concat round trip) ---
    iota_w = jax.lax.broadcasted_iota(jnp.int32, (BT, VOCAB_WORD), 1)
    iota_c = jax.lax.broadcasted_iota(jnp.int32, (BT, VOCAB_CHAR), 1)
    oh_w = (tw_ref[...] == iota_w).astype(jnp.bfloat16)                       # (BT, Vw)
    oh_c = (tc_ref[...] == iota_c).astype(jnp.bfloat16)                       # (BT, Vc)
    e_w = jnp.dot(oh_w, ew_ref[...], preferred_element_type=jnp.float32)      # (BT, DSZ_WORD)
    e_c = jnp.dot(oh_c, ec_ref[...], preferred_element_type=jnp.float32)      # (BT, DSZ_CHAR)
    # embed_dropout: nn.Dropout is identity in eval mode.
    # TODO(synk): training-mode dropout (p=0.5) not applied; eval semantics used.

    # --- decode() is a no-op in the base class -> identity; hidden stays None.        ---
    # --- embeddings_proj + output proj are pre-folded (Wf = Wp@Wo, bf = bp@Wo + bo),   ---
    # --- split per src key so no 16-lane concat is ever formed. Revert if decode()    ---
    # --- becomes a real decoder.                                                      ---
    y = jnp.dot(e_w.astype(jnp.bfloat16), wfw_ref[...], preferred_element_type=jnp.float32)
    y = y + jnp.dot(e_c.astype(jnp.bfloat16), wfc_ref[...], preferred_element_type=jnp.float32)
    out_ref[...] = (y + bf_ref[...]).astype(out_ref.dtype)                    # (BT, VSZ) f32


def lm_forward_fused(tw, tc, ew, ec, wfw, wfc, bf):
    """tw/tc: (BT, 1) int32 tokens; tables/weights pre-cast bf16; bf f32. Returns (BT, VSZ) f32."""
    return pl.pallas_call(
        _lm_kernel,
        out_shape=jax.ShapeDtypeStruct((BT, VSZ), jnp.float32),
        grid_spec=pltpu.PrefetchScalarGridSpec(
            num_scalar_prefetch=0,
            grid=(1,),  # single step: all operands + output easily fit VMEM
            in_specs=[
                pl.BlockSpec((BT, 1), lambda i: (0, 0)),                 # word tokens
                pl.BlockSpec((BT, 1), lambda i: (0, 0)),                 # char tokens
                pl.BlockSpec((VOCAB_WORD, DSZ_WORD), lambda i: (0, 0)),  # word emb table (bf16)
                pl.BlockSpec((VOCAB_CHAR, DSZ_CHAR), lambda i: (0, 0)),  # char emb table (bf16)
                pl.BlockSpec((DSZ_WORD, VSZ), lambda i: (0, 0)),         # Wp[:16] @ Wo (bf16)
                pl.BlockSpec((DSZ_CHAR, VSZ), lambda i: (0, 0)),         # Wp[16:] @ Wo (bf16)
                pl.BlockSpec((1, VSZ), lambda i: (0, 0)),                # fused bias (f32)
            ],
            out_specs=pl.BlockSpec((BT, VSZ), lambda i: (0, 0)),
        ),
        compiler_params=pltpu.CompilerParams(
            dimension_semantics=("arbitrary",)),
    )(tw, tc, ew, ec, wfw, wfc, bf)


def init_params(key):
    """Module-faithful parameters (f32, un-fused)."""
    ks = jax.random.split(key, 4)
    unif = 0.1
    return {
        "emb_word": jax.random.normal(ks[0], (VOCAB_WORD, DSZ_WORD), jnp.float32) * 0.02,
        "emb_char": jax.random.normal(ks[1], (VOCAB_CHAR, DSZ_CHAR), jnp.float32) * 0.02,
        # embeddings_proj = pytorch_linear(DSZ, HSZ); stored (in, out) for x @ W
        "wp": jax.random.uniform(ks[2], (DSZ, HSZ), jnp.float32, -unif, unif),
        "bp": jnp.zeros((1, HSZ), jnp.float32),
        # self.proj = pytorch_linear(HSZ, VSZ, unif); no weight tying (HSZ != tgt dsz)
        "wo": jax.random.uniform(ks[3], (HSZ, VSZ), jnp.float32, -unif, unif),
        "bo": jnp.zeros((1, VSZ), jnp.float32),
    }


def fuse_params(params):
    """One-time precompute: fold proj+output (valid ONLY while decode() is identity); cast bf16."""
    wf = params["wp"] @ params["wo"]                       # (DSZ, VSZ)
    bf = params["bp"] @ params["wo"] + params["bo"]        # (1, VSZ)
    return {
        "emb_word": params["emb_word"].astype(jnp.bfloat16),
        "emb_char": params["emb_char"].astype(jnp.bfloat16),
        "wf_word": wf[:DSZ_WORD].astype(jnp.bfloat16),
        "wf_char": wf[DSZ_WORD:].astype(jnp.bfloat16),
        "bf": bf.astype(jnp.float32),
    }


def forward(tokens_word, tokens_char, fused):
    """Reproduces LanguageModelBase.forward(input, hidden=None) -> (logits, hidden)."""
    tw = tokens_word.reshape(BT, 1).astype(jnp.int32)
    tc = tokens_char.reshape(BT, 1).astype(jnp.int32)
    logits = lm_forward_fused(tw, tc,
                              fused["emb_word"], fused["emb_char"],
                              fused["wf_word"], fused["wf_char"], fused["bf"])
    hidden = None  # init_hidden / decode of the base class carry no state
    return logits.reshape(B, T, VSZ), hidden


if __name__ == "__main__":
    key = jax.random.PRNGKey(0)
    params = init_params(key)
    fused = fuse_params(params)

    k1, k2 = jax.random.split(jax.random.PRNGKey(1))
    tokens_word = jax.random.randint(k1, (B, T), 0, VOCAB_WORD)
    tokens_char = jax.random.randint(k2, (B, T), 0, VOCAB_CHAR)

    logits, hidden = forward(tokens_word, tokens_char, fused)
    logits = jax.block_until_ready(logits)
    logits2d = logits.reshape(BT, VSZ)

    # --- reference 1: module-faithful f32 eval-mode forward (loose tol: bf16 weights) ---
    e = jnp.concatenate(
        [jnp.take(params["emb_word"], tokens_word, axis=0),
         jnp.take(params["emb_char"], tokens_char, axis=0)], axis=-1).reshape(BT, DSZ)
    ref_f32 = (e @ params["wp"] + params["bp"]) @ params["wo"] + params["bo"]
    assert jnp.allclose(logits2d, ref_f32, atol=5e-4, rtol=2e-2), "mismatch vs f32 reference"

    # --- reference 2: same fused bf16 math in plain JAX (tight tol) ---
    e_w = jnp.take(fused["emb_word"].astype(jnp.float32), tokens_word.reshape(-1), axis=0)
    e_c = jnp.take(fused["emb_char"].astype(jnp.float32), tokens_char.reshape(-1), axis=0)
    ref_bf16 = (e_w @ fused["wf_word"].astype(jnp.float32)
                + e_c @ fused["wf_char"].astype(jnp.float32) + fused["bf"])
    assert jnp.allclose(logits2d, ref_bf16, atol=1e-4, rtol=1e-4), "mismatch vs matched bf16 reference"

    assert logits.shape == (B, T, VSZ)
    assert hidden is None
    print("KERNEL_OK")
</pallas_src>

<mosaic_0001>
module attributes {stable_mosaic.version = 11 : i64} {
  func.func @_lm_kernel(%arg0: i32, %arg1: memref<16x1xi32, #tpu.memory_space<vmem>>, %arg2: memref<16x1xi32, #tpu.memory_space<vmem>>, %arg3: memref<64x16xbf16, #tpu.memory_space<vmem>>, %arg4: memref<48x16xbf16, #tpu.memory_space<vmem>>, %arg5: memref<16x128xbf16, #tpu.memory_space<vmem>>, %arg6: memref<16x128xbf16, #tpu.memory_space<vmem>>, %arg7: memref<1x128xf32, #tpu.memory_space<vmem>>, %arg8: memref<16x128xf32, #tpu.memory_space<vmem>>) attributes {dimension_semantics = [#tpu.dimension_semantics<arbitrary>], iteration_bounds = array<i64: 1>, scalar_prefetch = 0 : i64, scratch_operands = 0 : i64, tpu.core_type = #tpu.core_type<tc>, window_params = [{pipeline_mode = #tpu.pipeline_mode<synchronous>, transform_indices = @transform_0, window_bounds = array<i64: 16, 1>}, {pipeline_mode = #tpu.pipeline_mode<synchronous>, transform_indices = @transform_1, window_bounds = array<i64: 16, 1>}, {pipeline_mode = #tpu.pipeline_mode<synchronous>, transform_indices = @transform_2, window_bounds = array<i64: 64, 16>}, {pipeline_mode = #tpu.pipeline_mode<synchronous>, transform_indices = @transform_3, window_bounds = array<i64: 48, 16>}, {pipeline_mode = #tpu.pipeline_mode<synchronous>, transform_indices = @transform_4, window_bounds = array<i64: 16, 128>}, {pipeline_mode = #tpu.pipeline_mode<synchronous>, transform_indices = @transform_5, window_bounds = array<i64: 16, 128>}, {pipeline_mode = #tpu.pipeline_mode<synchronous>, transform_indices = @transform_6, window_bounds = array<i64: 1, 128>}, {pipeline_mode = #tpu.pipeline_mode<synchronous>, transform_indices = @transform_7, window_bounds = array<i64: 16, 128>}]} {
    %0 = tpu.iota {dimensions = array<i32: 1>} : vector<16x64xi32>
    %1 = tpu.iota {dimensions = array<i32: 1>} : vector<16x48xi32>
    %c0 = arith.constant 0 : index
    %c0_0 = arith.constant 0 : index
    %2 = vector.load %arg1[%c0, %c0_0] : memref<16x1xi32, #tpu.memory_space<vmem>>, vector<16x1xi32>
    %3 = vector.broadcast %2 : vector<16x1xi32> to vector<16x64xi32>
    %4 = arith.cmpi eq, %3, %0 : vector<16x64xi32>
    %5 = arith.extui %4 : vector<16x64xi1> to vector<16x64xi32>
    %6 = arith.sitofp %5 : vector<16x64xi32> to vector<16x64xf32>
    %7 = arith.truncf %6 : vector<16x64xf32> to vector<16x64xbf16>
    %c0_1 = arith.constant 0 : index
    %c0_2 = arith.constant 0 : index
    %8 = vector.load %arg2[%c0_1, %c0_2] : memref<16x1xi32, #tpu.memory_space<vmem>>, vector<16x1xi32>
    %9 = vector.broadcast %8 : vector<16x1xi32> to vector<16x48xi32>
    %10 = arith.cmpi eq, %9, %1 : vector<16x48xi32>
    %11 = arith.extui %10 : vector<16x48xi1> to vector<16x48xi32>
    %12 = arith.sitofp %11 : vector<16x48xi32> to vector<16x48xf32>
    %13 = arith.truncf %12 : vector<16x48xf32> to vector<16x48xbf16>
    %c0_3 = arith.constant 0 : index
    %c0_4 = arith.constant 0 : index
    %14 = vector.load %arg3[%c0_3, %c0_4] : memref<64x16xbf16, #tpu.memory_space<vmem>>, vector<64x16xbf16>
    %cst = arith.constant dense<0.000000e+00> : vector<16x16xf32>
    %15 = tpu.matmul %7, %14, %cst {dimension_numbers = #tpu.dot_dimension_numbers<[1], [0], [0], [1], [0, 0, 1, 1], [], []>} : vector<16x64xbf16>, vector<64x16xbf16>, vector<16x16xf32> -> vector<16x16xf32>
    %c0_5 = arith.constant 0 : index
    %c0_6 = arith.constant 0 : index
    %16 = vector.load %arg4[%c0_5, %c0_6] : memref<48x16xbf16, #tpu.memory_space<vmem>>, vector<48x16xbf16>
    %cst_7 = arith.constant dense<0.000000e+00> : vector<16x16xf32>
    %17 = tpu.matmul %13, %16, %cst_7 {dimension_numbers = #tpu.dot_dimension_numbers<[1], [0], [0], [1], [0, 0, 1, 1], [], []>} : vector<16x48xbf16>, vector<48x16xbf16>, vector<16x16xf32> -> vector<16x16xf32>
    %18 = arith.truncf %15 : vector<16x16xf32> to vector<16x16xbf16>
    %c0_8 = arith.constant 0 : index
    %c0_9 = arith.constant 0 : index
    %19 = vector.load %arg5[%c0_8, %c0_9] : memref<16x128xbf16, #tpu.memory_space<vmem>>, vector<16x128xbf16>
    %cst_10 = arith.constant dense<0.000000e+00> : vector<16x128xf32>
    %20 = tpu.matmul %18, %19, %cst_10 {dimension_numbers = #tpu.dot_dimension_numbers<[1], [0], [0], [1], [0, 0, 1, 1], [], []>} : vector<16x16xbf16>, vector<16x128xbf16>, vector<16x128xf32> -> vector<16x128xf32>
    %21 = arith.truncf %17 : vector<16x16xf32> to vector<16x16xbf16>
    %c0_11 = arith.constant 0 : index
    %c0_12 = arith.constant 0 : index
    %22 = vector.load %arg6[%c0_11, %c0_12] : memref<16x128xbf16, #tpu.memory_space<vmem>>, vector<16x128xbf16>
    %cst_13 = arith.constant dense<0.000000e+00> : vector<16x128xf32>
    %23 = tpu.matmul %21, %22, %cst_13 {dimension_numbers = #tpu.dot_dimension_numbers<[1], [0], [0], [1], [0, 0, 1, 1], [], []>} : vector<16x16xbf16>, vector<16x128xbf16>, vector<16x128xf32> -> vector<16x128xf32>
    %24 = arith.addf %20, %23 : vector<16x128xf32>
    %c0_14 = arith.constant 0 : index
    %c0_15 = arith.constant 0 : index
    %25 = vector.load %arg7[%c0_14, %c0_15] : memref<1x128xf32, #tpu.memory_space<vmem>>, vector<1x128xf32>
    %26 = vector.broadcast %25 : vector<1x128xf32> to vector<16x128xf32>
    %27 = arith.addf %24, %26 : vector<16x128xf32>
    %c0_16 = arith.constant 0 : index
    %c0_17 = arith.constant 0 : index
    %28 = vector.load %arg8[%c0_16, %c0_17] : memref<16x128xf32, #tpu.memory_space<vmem>>, vector<16x128xf32>
    tpu.vector_store %arg8[%c0_16, %c0_17], %27 {strides = array<i32>} : memref<16x128xf32, #tpu.memory_space<vmem>>, vector<16x128xf32>,
    return
  }
  func.func @transform_0(%arg0: i32) -> (i32, i32) {
    %c0_i32 = arith.constant 0 : i32
    %c0_i32_0 = arith.constant 0 : i32
    %c0_i32_1 = arith.constant 0 : i32
    return %c0_i32, %c0_i32_0 : i32, i32
  }
  func.func @transform_1(%arg0: i32) -> (i32, i32) {
    %c0_i32 = arith.constant 0 : i32
    %c0_i32_0 = arith.constant 0 : i32
    %c0_i32_1 = arith.constant 0 : i32
    return %c0_i32, %c0_i32_0 : i32, i32
  }
  func.func @transform_2(%arg0: i32) -> (i32, i32) {
    %c0_i32 = arith.constant 0 : i32
    %c0_i32_0 = arith.constant 0 : i32
    %c0_i32_1 = arith.constant 0 : i32
    return %c0_i32, %c0_i32_0 : i32, i32
  }
  func.func @transform_3(%arg0: i32) -> (i32, i32) {
    %c0_i32 = arith.constant 0 : i32
    %c0_i32_0 = arith.constant 0 : i32
    %c0_i32_1 = arith.constant 0 : i32
    return %c0_i32, %c0_i32_0 : i32, i32
  }
  func.func @transform_4(%arg0: i32) -> (i32, i32) {
    %c0_i32 = arith.constant 0 : i32
    %c0_i32_0 = arith.constant 0 : i32
    %c0_i32_1 = arith.constant 0 : i32
    return %c0_i32, %c0_i32_0 : i32, i32
  }
  func.func @transform_5(%arg0: i32) -> (i32, i32) {
    %c0_i32 = arith.constant 0 : i32
    %c0_i32_0 = arith.constant 0 : i32
    %c0_i32_1 = arith.constant 0 : i32
    return %c0_i32, %c0_i32_0 : i32, i32
  }
  func.func @transform_6(%arg0: i32) -> (i32, i32) {
    %c0_i32 = arith.constant 0 : i32
    %c0_i32_0 = arith.constant 0 : i32
    %c0_i32_1 = arith.constant 0 : i32
    return %c0_i32, %c0_i32_0 : i32, i32
  }
  func.func @transform_7(%arg0: i32) -> (i32, i32) {
    %c0_i32 = arith.constant 0 : i32
    %c0_i32_0 = arith.constant 0 : i32
    %c0_i32_1 = arith.constant 0 : i32
    return %c0_i32, %c0_i32_0 : i32, i32
  }
}

</mosaic_0001>

<bundles_post_ra>
// kernel: tpu_custom_call.1
= control target key start
LH: loop header
LB: loop body
LE: loop exit
PB: predicated region body
PF: predicated region fallthrough
CT: control target
= control target key end

     0   :  { %v444_v2 = vmov 0   ;;  %v445_v6 = vmov 0.0   ;;  %vm446_vm0 = vmmov 0   ;;  %s539_s0 = inlined_call_operand.vmem [shape: s32[16,1], index: 0, kind: input, shape index: {}]   ;;  %s540_s1 = inlined_call_operand.vmem [shape: s32[16,1], index: 1, kind: input, shape index: {}]   ;;  %s541_s2 = inlined_call_operand.vmem [shape: bf16[64,16], index: 2, kind: input, shape index: {}]   ;;  %s542_s3 = inlined_call_operand.vmem [shape: bf16[48,16], index: 3, kind: input, shape index: {}]   ;;  %s543_s4 = inlined_call_operand.vmem [shape: bf16[16,128], index: 4, kind: input, shape index: {}]   ;;  %s544_s5 = inlined_call_operand.vmem [shape: bf16[16,128], index: 5, kind: input, shape index: {}]   ;;  %s545_s6 = inlined_call_operand.vmem [shape: f32[1,128], index: 6, kind: input, shape index: {}]   ;;  %s546_s7 = inlined_call_operand.hbm [shape: f32[16,128], index: 7, kind: output, shape index: {}]  }
   0x1   :  { %v45_v0 = vld [vmem:[%s540_s1] sm:$0xff]  ;;  %412 = vset.pattern.permute.xlu1 %v444_v2  ;;  %411 = vset.pattern.permute.xlu0 %v444_v2  ;;  %v46_v3 = vld [vmem:[%s540_s1 + $0x8] sm:$0xff]  ;;  %v413_v5 = vld [vmem:[%s541_s2 + $0x18] sm:$0xff]  }
   0x2   :  { %v30_v1 = vld [vmem:[%s539_s0] sm:$0xff]  ;;  %v31_v4 = vld [vmem:[%s539_s0 + $0x8] sm:$0xff]  ;;  %48 = vperm.xlu1 %412, %v45_v0   ;;  %371 = vmatprep.subr.bf16.mxu0 %v445_v6  ;;  %v414_v7 = vld [vmem:[%s541_s2 + $0x10] sm:$0xff]  }
   0x3   :  { %33 = vperm.xlu0 %411, %v30_v1   ;;  %383 = vmatprep.subr.bf16.mxu1 %v445_v6  ;;  %v415_v8 = vld [vmem:[%s542_s3 + $0x10] sm:$0xff]   ;;  %v417_v9 = vld [vmem:[%s542_s3 + $0x8] sm:$0xff]  }
   0x4   :  { %372 = vmatpush3.bf16.msra.mxu0 %v413_v5  ;;  %379 = vmatprep.mubr.msk.bf16.mxu0 %vm446_vm0, %v445_v6  ;;  %v416_v10 = vld [vmem:[%s541_s2 + $0x8] sm:$0xff]  }
   0x5   :  { %373 = vmatprep.subr.bf16.mxu0 %v445_v6  ;;  %384 = vmatpush3.bf16.msra.mxu1 %v415_v8 }
   0x6   :  { %51 = vperm.xlu1 %412, %v46_v3   ;;  %389 = vmatprep.mubr.msk.bf16.mxu1 %vm446_vm0, %v445_v6 }
   0x7   :  { %36 = vperm.xlu0 %411, %v31_v4   ;;  %385 = vmatprep.subr.bf16.mxu1 %v445_v6 }
   0x8   :  { %374 = vmatpush3.bf16.msra.mxu0 %v414_v7 }
   0x9   :  { %375 = vmatprep.subr.bf16.mxu0 %v445_v6 }
   0xa   :  { %12 = vsyncpa [#allocation3], 0  ;;  %386 = vmatpush3.bf16.msra.mxu1 %v417_v9  ;;  %v419_v11 = vld [vmem:[%s542_s3] sm:$0xff]   ;;  %v28_v13 = vlaneseq  ;;  %vm92_vm5 = vcmask 523264   ;;  %vm161_vm6 = vcmask 392192   ;;  %vm218_vm7 = vcmask 130048  }
   0xb   :  { %387 = vmatprep.subr.bf16.mxu1 %v445_v6  ;;  %v418_v12 = vld [vmem:[%s541_s2] sm:$0xff]   ;;  %s447_s23 = smov [#allocation2]  }
   0xc   :  { %376 = vmatpush3.bf16.msra.mxu0 %v416_v10  ;;  %v29_v14 = vand.u32 127, %v28_v13  ;;  %v420_v23 = vld [vmem:[%s544_s5] sm:$0xff]   ;;  %s329_s24 = sshll.u32 %s447_s23, 4  ;;  %s330_s24 = int_to_ptr.vmem [resolvable:$true] %s329_s24 }
   0xd   :  { %377 = vmatprep.subr.bf16.mxu0 %v445_v6  ;;  %v421_v24 = vld [vmem:[%s543_s4] sm:$0xff]   ;;  %s422_s25 = scalar_lea.vmem %s330_s24, 256  ;;  %p427_p1 = scmp.lt.s32.totalorder %s330_s24, %s330_s24 }
   0xe   :  { %388 = vmatpush3.bf16.msra.mxu1 %v419_v11  ;;  %v357_v39 = vld [vmem:[%s545_s6] ss:$0 sm:$0xff]  ;;  %p423_p0 = scmp.ne.s32.totalorder %s330_s24, %s422_s25  ;;  %p428_p2 = scmp.lt.s32.totalorder %s422_s25, %s422_s25 }
   0xf   :  { %393 = vmatprep.subr.bf16.mxu1 %v445_v6 }
  0x10   :  { %378 = vmatpush3.bf16.msra.mxu0 %v418_v12  ;;  %p429_p3 = por %p428_p2, %p427_p1 }
  0x11   :  { %399 = vmatprep.subr.bf16.mxu0 %v445_v6 }
  0x12   :  { %p430_p4 = pnand %p429_p3, %p423_p0 }
  0x7d   :  { %v49_v15 = vpop.permute.xlu1 %48 }
  0x7e   :  { %v34_v16 = vpop.permute.xlu0 %33  ;;  %vm53_vm1 = vcmp.eq.s32.totalorder %v49_v15, %v29_v14 }
  0x7f   :  { %vm38_vm2 = vcmp.eq.s32.totalorder %v34_v16, %v29_v14  ;;  %v342_v19 = vsel %vm53_vm1, 1.0, %v445_v6 }
  0x80   :  { %v340_v20 = vsel %vm38_vm2, 1.0, %v445_v6 }
  0x81   :  { %v52_v17 = vpop.permute.xlu1 %51 }
  0x82   :  { %v37_v18 = vpop.permute.xlu0 %36  ;;  %vm54_vm3 = vcmp.eq.s32.totalorder %v52_v17, %v29_v14 }
  0x83   :  { %vm39_vm4 = vcmp.eq.s32.totalorder %v37_v18, %v29_v14  ;;  %v343_v21 = vsel %vm54_vm3, 1.0, %v445_v6 }
  0x84   :  { %v341_v22 = vsel %vm39_vm4, 1.0, %v445_v6  ;;  %v59_v25 = vpack.c.bf16 %v343_v21, %v342_v19 }
  0x85   :  { %v44_v26 = vpack.c.bf16 %v341_v22, %v340_v20 }
  0x86   :  { %390 = vmatmul.mubr.msk.bf16.vlgmr.msra.gmra.mxu1 %vm161_vm6, %v59_v25 }
  0x87   :  { %380 = vmatmul.mubr.msk.bf16.vlgmr.msra.gmra.mxu0 %vm92_vm5, %v44_v26  ;;  %394 = vmatpush3.bf16.msra.mxu1 %v420_v23 }
  0x88   :  { %400 = vmatpush3.bf16.msra.mxu0 %v421_v24  ;;  %395 = vmatprep.mubr.msk.bf16.mxu1 %vm446_vm0, %v445_v6 }
  0x89   :  { %401 = vmatprep.mubr.msk.bf16.mxu0 %vm446_vm0, %v445_v6 }
 0x146   :  { %v199_v28 = vpop.f32.mrf.mxu1 }
 0x147   :  { %v130_v27 = vpop.f32.mrf.mxu0 }
 0x148   :  { %v391_v30 = vpop.f32.mrf.mxu1 }
 0x149   :  { %v381_v29 = vpop.f32.mrf.mxu0 }
 0x14a   :  { %v202_v32 = vpop.f32.mrf.mxu1 }
 0x14b   :  { %v133_v31 = vpop.f32.mrf.mxu0  ;;  %v209_v34 = vpack.c.bf16 %v202_v32, %v199_v28 }
 0x14c   :  { %v206_v33 = vpack.c.bf16 %v133_v31, %v130_v27  ;;  %v392_v36 = vpop.f32.mrf.mxu1 }
 0x14d   :  { %v382_v35 = vpop.f32.mrf.mxu0  ;;  %396 = vmatmul.mubr.msk.bf16.vlgmr.msra.gmra.mxu1 %vm218_vm7, %v209_v34 }
 0x14e   :  { %402 = vmatmul.mubr.msk.bf16.vlgmr.msra.gmra.mxu0 %vm218_vm7, %v206_v33 }
 0x20d   :  { %v256_v37 = vpop.f32.mrf.mxu1 }
 0x20e   :  { %v306_v38 = vpop.f32.mrf.mxu0 }
 0x20f   :  { %v307_v40 = vadd.f32 %v306_v38, %v256_v37  ;;  %v397_v41 = vpop.f32.mrf.mxu1 }
 0x210   :  { %v403_v42 = vpop.f32.mrf.mxu0 }
 0x211   :  { %v320_v43 = vadd.f32 %v357_v39, %v307_v40  ;;  %v259_v44 = vpop.f32.mrf.mxu1 }
 0x212   :  { %v309_v45 = vpop.f32.mrf.mxu0 }
 0x213   :  { %322 = vst [vmem:[#allocation2] sm:$0xff] %v320_v43  ;;  %v310_v46 = vadd.f32 %v309_v45, %v259_v44  ;;  %v398_v47 = vpop.f32.mrf.mxu1 }
 0x214   :  { %v404_v48 = vpop.f32.mrf.mxu0 }
 0x215   :  { %v321_v49 = vadd.f32 %v357_v39, %v310_v46 }
 0x217   :  { %323 = vst [vmem:[#allocation2 + $0x8] sm:$0xff] %v321_v49 }
 0x218   :  { %433 = shalt.err (!%p430_p4)
}
 0x219   :  { %s448_s6 = smov 128   ;;  %s449_s26 = smov 8  }
 0x21a   :  { %335 = dma.vmem_to_hbm [thread:$0]  %s330_s24, 256, %s546_s7, [#allocation3], %s448_s6, %s448_s6, %s449_s26  }
 0x21b   :  { %442 = dma.done.wait [#allocation3], 256  }
 0x21c   :  { %443 = vsyncadd [#allocation3], 4294967040 }
 0x21d   :  { %339 = vsyncpa [#allocation3], 1 }

</bundles_post_ra>
